<compile_context>
chip_gen: v7x
topology: tpu7x:2x2x1
jax: 0.10.0
libtpu: 0.0.40
codegen_flags: <defaults>
</compile_context>

<pallas_src>
import functools

import jax
import jax.numpy as jnp
from jax import lax
from jax.experimental import pallas as pl
from jax.experimental.pallas import tpu as pltpu


def _round_up(x, m):
    return (x + m - 1) // m * m


def _linear_relu_kernel(x_ref, w_ref, *rest, nk, k_rem, compute_dtype, has_bias):
    """One (tm, tn) output tile of relu(x @ W + b), reduced over the K grid axis."""
    if has_bias:
        b_ref, o_ref, acc_ref = rest
    else:
        b_ref = None
        o_ref, acc_ref = rest

    k = pl.program_id(2)

    x_t = x_ref[...]
    w_t = w_ref[...]
    if x_t.dtype != compute_dtype:
        # Free VPU cast (used for small-M shapes where a wrapper-side astype
        # would be a full extra HBM pass over x).
        x_t = x_t.astype(compute_dtype)

    if k_rem:
        # Last K block is partial: zero the stale tail of BOTH operands so
        # out-of-bounds VMEM contents never contaminate the accumulation.
        is_last = k == nk - 1
        kc = lax.broadcasted_iota(jnp.int32, x_t.shape, 1)
        x_t = jnp.where(jnp.logical_or(jnp.logical_not(is_last), kc < k_rem), x_t, 0)
        kr = lax.broadcasted_iota(jnp.int32, w_t.shape, 0)
        w_t = jnp.where(jnp.logical_or(jnp.logical_not(is_last), kr < k_rem), w_t, 0)

    part = jnp.dot(x_t, w_t, preferred_element_type=jnp.float32)

    def _epilogue(y):
        if has_bias:
            y = y + b_ref[...].astype(jnp.float32)
        o_ref[...] = jnp.maximum(y, 0.0).astype(o_ref.dtype)

    if nk == 1:
        # Single K step: skip the accumulator round-trip entirely.
        _epilogue(part)
    else:
        @pl.when(k == 0)
        def _():
            acc_ref[...] = part          # direct write, no zero+add pass

        @pl.when(k > 0)
        def _():
            acc_ref[...] += part

        @pl.when(k == nk - 1)
        def _():
            _epilogue(acc_ref[...])


def linear_relu_pallas(x, weight, bias=None, *, tile_m=None, tile_n=None,
                       tile_k=None, compute_dtype=jnp.bfloat16):
    """Fused linear + ReLU:  relu(x @ weight^T + bias).

    Args:
      x:       [..., K] input.
      weight:  [N, K] weight (PyTorch nn.Linear layout).
      bias:    [N] bias or None.
      tile_m/tile_n/tile_k: optional GEMM tile overrides (128/8-aligned).
      compute_dtype: MXU compute dtype (default bf16, the native MXU path on
        v5e/v6e/v7x). Accumulation is always f32.  None => x.dtype (exact).

    Returns:
      [..., N] output with x's leading dims and original dtype.
    """
    *lead, k_dim = x.shape
    n_dim, kw = weight.shape
    assert kw == k_dim, "weight in_features must match x last dim"

    out_dtype = x.dtype
    compute = jnp.dtype(compute_dtype) if compute_dtype is not None else jnp.dtype(x.dtype)

    m_dim = 1
    for d in lead:
        m_dim *= d
    x2d = x.reshape(m_dim, k_dim)

    # One-time HBM pass: weight into MXU-native [K, N] layout + compute dtype,
    # amortized over every M tile (weights are fully reused).
    w_t = weight.T.astype(compute)

    # Wrapper-side activation cast only when M is large enough that halving
    # in-kernel x DMA pays for the extra HBM pass; otherwise cast in-kernel.
    if x2d.dtype != compute and m_dim >= 2048:
        x2d = x2d.astype(compute)

    # Default tiles sized for the compute dtype; double-buffered working set
    # stays well under v7x's 64 MiB VMEM (vmem_limit_bytes set explicitly).
    if compute.itemsize <= 2:
        dm, dn, dk = 512, 1024, 1024
    else:
        dm, dn, dk = 256, 512, 512
    tile_m = dm if tile_m is None else tile_m
    tile_n = dn if tile_n is None else tile_n
    tile_k = dk if tile_k is None else tile_k

    # Block dims must be (8,128)-aligned OR equal to the full array dim.
    tm = m_dim if m_dim <= tile_m else tile_m
    tn = n_dim if n_dim <= tile_n else tile_n
    tk = k_dim if k_dim <= tile_k else tile_k

    # Megacore (v7x): ensure a 'parallel' axis has >=2 tiles for small-M shapes.
    if pl.cdiv(m_dim, tm) == 1 and pl.cdiv(n_dim, tn) == 1 and n_dim >= 512:
        tn = _round_up(pl.cdiv(n_dim, 2), 128)

    grid = (pl.cdiv(m_dim, tm), pl.cdiv(n_dim, tn), pl.cdiv(k_dim, tk))
    nk = grid[2]
    k_rem = k_dim % tk  # nonzero only when the last K block is partial

    has_bias = bias is not None

    # Deeper weight buffering when weight-streaming-bound (small M, long K loop).
    w_spec_kwargs = {}
    if grid[0] == 1 and nk >= 4:
        w_spec_kwargs["pipeline_mode"] = pl.Buffered(3)
    w_bufs = 3 if "pipeline_mode" in w_spec_kwargs else 2

    in_specs = [
        pl.BlockSpec((tm, tk), lambda i, j, k: (i, k)),                 # x tile
        pl.BlockSpec((tk, tn), lambda i, j, k: (k, j), **w_spec_kwargs),  # W [K,N] tile
    ]
    inputs = [x2d, w_t]
    if has_bias:
        b2d = bias.reshape(1, n_dim)
        in_specs.append(pl.BlockSpec((1, tn), lambda i, j, k: (0, j)))  # bias tile
        inputs.append(b2d)

    # Explicit scoped-VMEM budget from the actual buffer sizes (+ headroom).
    def _nbytes(n_elems, dt):
        return int(n_elems) * jnp.dtype(dt).itemsize

    vmem_bytes = (2 * _nbytes(tm * tk, x2d.dtype)
                  + w_bufs * _nbytes(tk * tn, compute)
                  + 2 * _nbytes(tm * tn, out_dtype)
                  + _nbytes(tm * tn, jnp.float32))
    if has_bias:
        vmem_bytes += 2 * _nbytes(tn, bias.dtype)
    vmem_limit = int(min(max(int(vmem_bytes * 1.25) + (4 << 20), 16 << 20), 64 << 20))

    cost = pl.CostEstimate(
        flops=2 * m_dim * n_dim * k_dim,
        transcendentals=0,
        bytes_accessed=(grid[1] * _nbytes(m_dim * k_dim, x2d.dtype)
                        + grid[0] * _nbytes(k_dim * n_dim, compute)
                        + _nbytes(m_dim * n_dim, out_dtype)),
    )

    kernel = functools.partial(
        _linear_relu_kernel,
        nk=nk, k_rem=int(k_rem), compute_dtype=compute, has_bias=has_bias)

    y2d = pl.pallas_call(
        kernel,
        out_shape=jax.ShapeDtypeStruct((m_dim, n_dim), out_dtype),
        grid_spec=pltpu.PrefetchScalarGridSpec(
            num_scalar_prefetch=0,
            grid=grid,
            in_specs=in_specs,
            out_specs=pl.BlockSpec((tm, tn), lambda i, j, k: (i, j)),
            scratch_shapes=[pltpu.VMEM((tm, tn), jnp.float32)],
        ),
        compiler_params=pltpu.CompilerParams(
            dimension_semantics=("parallel", "parallel", "arbitrary"),
            vmem_limit_bytes=vmem_limit,
        ),
        cost_estimate=cost,
    )(*inputs)

    return y2d.reshape(*lead, n_dim)


if __name__ == "__main__":
    # Small deterministic problem consistent with the module's forward:
    #   x [batch, seq, hidden] through nn.Linear(hidden, out) + ReLU.
    batch, seq, hidden, out_features = 2, 8, 32, 48

    key = jax.random.PRNGKey(0)
    kx, kw, kb = jax.random.split(key, 3)

    x = jax.random.normal(kx, (batch, seq, hidden), dtype=jnp.float32)
    weight = jax.random.normal(kw, (out_features, hidden), dtype=jnp.float32) * 0.05
    bias = jax.random.normal(kb, (out_features,), dtype=jnp.float32) * 0.01

    ref = jnp.maximum(jnp.einsum("bsk,nk->bsn", x, weight) + bias, 0.0)

    # Exact path (compute_dtype=None => f32 MXU) -- tight tolerance.
    y_f32 = jax.block_until_ready(linear_relu_pallas(x, weight, bias, compute_dtype=None))
    assert y_f32.shape == ref.shape, (y_f32.shape, ref.shape)
    assert bool(jnp.allclose(y_f32, ref, atol=1e-4, rtol=1e-4)), \
        "Pallas linear+relu (f32) mismatch vs reference"

    # Default path (bf16 MXU, f32 accumulation) -- loose tolerance.
    y_bf16 = jax.block_until_ready(linear_relu_pallas(x, weight, bias))
    assert y_bf16.dtype == x.dtype
    assert bool(jnp.allclose(y_bf16, ref, atol=3e-2, rtol=3e-2)), \
        "Pallas linear+relu (bf16 compute) mismatch vs reference"

    # Bias-free variant (bias DMA/add skipped in-kernel).
    ref_nb = jnp.maximum(jnp.einsum("bsk,nk->bsn", x, weight), 0.0)
    y_nb = jax.block_until_ready(linear_relu_pallas(x, weight, None, compute_dtype=None))
    assert bool(jnp.allclose(y_nb, ref_nb, atol=1e-4, rtol=1e-4)), \
        "Pallas linear+relu (no bias) mismatch vs reference"

    print("KERNEL_OK")
</pallas_src>

<mosaic_0001>
module attributes {stable_mosaic.version = 11 : i64} {
  func.func @_linear_relu_kernel(%arg0: i32, %arg1: i32, %arg2: i32, %arg3: memref<16x32xf32, #tpu.memory_space<vmem>>, %arg4: memref<32x48xf32, #tpu.memory_space<vmem>>, %arg5: memref<1x48xf32, #tpu.memory_space<vmem>>, %arg6: memref<16x48xf32, #tpu.memory_space<vmem>>, %arg7: memref<16x48xf32, #tpu.memory_space<vmem>>) attributes {dimension_semantics = [#tpu.dimension_semantics<parallel>, #tpu.dimension_semantics<parallel>, #tpu.dimension_semantics<arbitrary>], iteration_bounds = array<i64: 1, 1, 1>, scalar_prefetch = 0 : i64, scratch_operands = 1 : i64, tpu.core_type = #tpu.core_type<tc>, window_params = [{transform_indices = @transform_0, window_bounds = array<i64: 16, 32>}, {transform_indices = @transform_1, window_bounds = array<i64: 32, 48>}, {transform_indices = @transform_2, window_bounds = array<i64: 1, 48>}, {transform_indices = @transform_3, window_bounds = array<i64: 16, 48>}]} {
    %c0 = arith.constant 0 : index
    %c0_0 = arith.constant 0 : index
    %0 = vector.load %arg3[%c0, %c0_0] : memref<16x32xf32, #tpu.memory_space<vmem>>, vector<16x32xf32>
    %c0_1 = arith.constant 0 : index
    %c0_2 = arith.constant 0 : index
    %1 = vector.load %arg4[%c0_1, %c0_2] : memref<32x48xf32, #tpu.memory_space<vmem>>, vector<32x48xf32>
    %cst = arith.constant dense<0.000000e+00> : vector<16x48xf32>
    %2 = tpu.matmul %0, %1, %cst {dimension_numbers = #tpu.dot_dimension_numbers<[1], [0], [0], [1], [0, 0, 1, 1], [], []>} : vector<16x32xf32>, vector<32x48xf32>, vector<16x48xf32> -> vector<16x48xf32>
    %c0_3 = arith.constant 0 : index
    %c0_4 = arith.constant 0 : index
    %3 = vector.load %arg5[%c0_3, %c0_4] : memref<1x48xf32, #tpu.memory_space<vmem>>, vector<1x48xf32>
    %4 = vector.broadcast %3 : vector<1x48xf32> to vector<16x48xf32>
    %5 = arith.addf %2, %4 : vector<16x48xf32>
    %cst_5 = arith.constant 0.000000e+00 : f32
    %6 = vector.broadcast %cst_5 : f32 to vector<16x48xf32>
    %7 = arith.maximumf %5, %6 : vector<16x48xf32>
    %c0_6 = arith.constant 0 : index
    %c0_7 = arith.constant 0 : index
    %8 = vector.load %arg6[%c0_6, %c0_7] : memref<16x48xf32, #tpu.memory_space<vmem>>, vector<16x48xf32>
    tpu.vector_store %arg6[%c0_6, %c0_7], %7 {strides = array<i32>} : memref<16x48xf32, #tpu.memory_space<vmem>>, vector<16x48xf32>,
    return
  }
  func.func @transform_0(%arg0: i32, %arg1: i32, %arg2: i32) -> (i32, i32) {
    %c0_i32 = arith.constant 0 : i32
    return %arg0, %arg2 : i32, i32
  }
  func.func @transform_1(%arg0: i32, %arg1: i32, %arg2: i32) -> (i32, i32) {
    %c0_i32 = arith.constant 0 : i32
    return %arg2, %arg1 : i32, i32
  }
  func.func @transform_2(%arg0: i32, %arg1: i32, %arg2: i32) -> (i32, i32) {
    %c0_i32 = arith.constant 0 : i32
    %c0_i32_0 = arith.constant 0 : i32
    return %c0_i32, %arg1 : i32, i32
  }
  func.func @transform_3(%arg0: i32, %arg1: i32, %arg2: i32) -> (i32, i32) {
    %c0_i32 = arith.constant 0 : i32
    return %arg0, %arg1 : i32, i32
  }
}

</mosaic_0001>

<bundles_post_ra>
// kernel: tpu_custom_call.1
= control target key start
LH: loop header
LB: loop body
LE: loop exit
PB: predicated region body
PF: predicated region fallthrough
CT: control target
= control target key end

     0   :  { %8 = vsyncpa [#allocation4], 0  ;;  %s339_s0 = inlined_call_operand.hbm [shape: f32[16,32], index: 0, kind: input, shape index: {}]   ;;  %s340_s1 = inlined_call_operand.hbm [shape: f32[32,48], index: 1, kind: input, shape index: {}]   ;;  %s341_s2 = inlined_call_operand.vmem [shape: f32[1,48], index: 2, kind: input, shape index: {}]   ;;  %s342_s3 = inlined_call_operand.hbm [shape: f32[16,48], index: 3, kind: output, shape index: {}]  }
   0x1   :  { %9 = vsyncpa [#allocation7], 0 }
   0x2   :  { %10 = vsyncpa [#allocation5], 0  ;;  %s266_s12 = smov [#allocation3]   ;;  %s194_s16 = scalar_lea.hbm %s339_s0, 256 }
   0x3   :  { %s16_s13 = sshll.u32 %s266_s12, 4  ;;  %p195_p0 = scmp.ne.s32.totalorder %s339_s0, %s194_s16  ;;  %s17_s13 = int_to_ptr.vmem [resolvable:$true] %s16_s13 }
   0x4   :  { %p198_p1 = scmp.lt.u32.totalorder %s194_s16, %s339_s0 }
   0x6   :  { %p200_p2 = pnand %p198_p1, %p195_p0 }
   0x8   :  { %203 = shalt.err (!%p200_p2)
}
   0x9   :  { %s204_s21 = scalar_lea.vmem %s17_s13, 256  ;;  %p209_p4 = scmp.lt.s32.totalorder %s17_s13, %s17_s13 }
   0xa   :  { %p205_p3 = scmp.ne.s32.totalorder %s17_s13, %s204_s21  ;;  %p210_p5 = scmp.lt.s32.totalorder %s204_s21, %s204_s21 }
   0xc   :  { %p211_p6 = por %p210_p5, %p209_p4 }
   0xe   :  { %p212_p7 = pnand %p211_p6, %p205_p3 }
  0x10   :  { %215 = shalt.err (!%p212_p7)
}
  0x11   :  { %s267_s22 = smov 128   ;;  %s268_s23 = smov 8  }
  0x12   :  { %22 = dma.hbm_to_vmem [thread:$0]  %s339_s0, 256, %s17_s13, [#allocation4], %s267_s22, %s267_s22, %s268_s23  }
  0x13   :  { %s269_s26 = smov [#allocation6]   ;;  %s216_s30 = scalar_lea.hbm %s340_s1, 512 }
  0x14   :  { %s28_s27 = sshll.u32 %s269_s26, 4  ;;  %p217_p8 = scmp.ne.s32.totalorder %s340_s1, %s216_s30  ;;  %s29_s27 = int_to_ptr.vmem [resolvable:$true] %s28_s27 }
  0x15   :  { %p220_p9 = scmp.lt.u32.totalorder %s216_s30, %s340_s1 }
  0x17   :  { %p222_p10 = pnand %p220_p9, %p217_p8 }
  0x19   :  { %225 = shalt.err (!%p222_p10)
}
  0x1a   :  { %s226_s8 = scalar_lea.vmem %s29_s27, 512  ;;  %p231_p12 = scmp.lt.s32.totalorder %s29_s27, %s29_s27 }
  0x1b   :  { %p227_p11 = scmp.ne.s32.totalorder %s29_s27, %s226_s8  ;;  %p232_p13 = scmp.lt.s32.totalorder %s226_s8, %s226_s8 }
  0x1d   :  { %p233_p0 = por %p232_p13, %p231_p12 }
  0x1f   :  { %p234_p1 = pnand %p233_p0, %p227_p11 }
  0x21   :  { %237 = shalt.err (!%p234_p1)
}
  0x22   :  { %34 = dma.hbm_to_vmem [thread:$0]  %s340_s1, 512, %s29_s27, [#allocation7], %s267_s22, %s267_s22, %s268_s23  }
  0x23   :  { %260 = dma.done.wait [#allocation4], 256  }
  0x24   :  { %261 = vsyncadd [#allocation4], 4294967040 }
  0x25   :  { %262 = dma.done.wait [#allocation7], 512  }
  0x26   :  { %263 = vsyncadd [#allocation7], 4294966784  ;;  %vm56_vm0 = vcmask 261120   ;;  %v45_v0 = vld [vmem:[#allocation6] sm:$0xff]  ;;  %v46_v1 = vld [vmem:[#allocation6 + $0x8] sm:$0xff]  ;;  %s270_s11 = smov [#allocation8]  }
  0x27   :  { %v47_v2 = vld [vmem:[#allocation6 + $0x10] sm:$0xff]  ;;  %v181_v3 = vpack.c.bf16 %v46_v1, %v45_v0  ;;  %v48_v4 = vld [vmem:[#allocation6 + $0x18] sm:$0xff]  ;;  %s148_s12 = sshll.u32 %s270_s11, 4  ;;  %vm140_vm1 = vcmask 392192   ;;  %s149_s12 = int_to_ptr.vmem [resolvable:$true] %s148_s12 }
  0x28   :  { %v43_v5 = vld [vmem:[#allocation3] sm:$0xff]  ;;  %v185_v6 = vpack.c.bf16 %v48_v4, %v47_v2  ;;  %v44_v7 = vld [vmem:[#allocation3 + $0x8] sm:$0xff]  ;;  %s238_s13 = scalar_lea.vmem %s149_s12, 256  ;;  %p243_p3 = scmp.lt.s32.totalorder %s149_s12, %s149_s12 }
  0x29   :  { %178 = vmatprep.mubr.msk.f32.mxu0 %vm56_vm0, %v43_v5  ;;  %182 = vmatprep.subr.bf16.mxu0 %v181_v3  ;;  %v161_v8 = vld [vmem:[%s341_s2] ss:$0 sm:$0xff]  ;;  %p239_p2 = scmp.ne.s32.totalorder %s149_s12, %s238_s13  ;;  %p244_p4 = scmp.lt.s32.totalorder %s238_s13, %s238_s13 }
  0x2a   :  { %184 = vmatpush3.bf16.msra.mxu0 %v181_v3 }
  0x2b   :  { %186 = vmatprep.subr.bf16.mxu0 %v185_v6  ;;  %p245_p5 = por %p244_p4, %p243_p3 }
  0x2d   :  { %p246_p6 = pnand %p245_p5, %p239_p2 }
  0x2e   :  { %188 = vmatpush3.bf16.msra.mxu0 %v185_v6 }
  0x31   :  { %179 = vmatmul.mubr.msk.f32.vlgmr.msra.gmra.mrb[0].mxu0 %vm56_vm0, %v44_v7 }
 0x104   :  { %v180_v9 = vpop.f32.mrb[0].mxu0 }
 0x105   :  { %v135_v10 = vadd.f32 %v180_v9, %v161_v8  ;;  %v129_v11 = vpop.f32.mrb[1].mxu0 }
 0x106   :  { %v130_v12 = vadd.f32 %v161_v8, %v129_v11 }
 0x107   :  { %v139_v13 = vmax.f32 %v135_v10, 0.0 }
 0x108   :  { %v138_v14 = vmax.f32 %v130_v12, 0.0 }
 0x109   :  { %142 = vst.msk [vmem:[#allocation8 + $0x8] sm:$0xff] %vm140_vm1, %v139_v13 }
 0x10a   :  { %141 = vst.msk [vmem:[#allocation8] sm:$0xff] %vm140_vm1, %v138_v14 }
 0x10b   :  { %249 = shalt.err (!%p246_p6)
}
 0x10c   :  { %s250_s15 = scalar_lea.hbm %s342_s3, 256 }
 0x10d   :  { %p251_p7 = scmp.ne.s32.totalorder %s342_s3, %s250_s15  ;;  %p254_p8 = scmp.lt.u32.totalorder %s250_s15, %s342_s3 }
 0x10f   :  { %p256_p9 = pnand %p254_p8, %p251_p7 }
 0x111   :  { %259 = shalt.err (!%p256_p9)
}
 0x112   :  { %154 = dma.vmem_to_hbm [thread:$0]  %s149_s12, 256, %s342_s3, [#allocation5], %s267_s22, %s267_s22, %s268_s23  }
 0x113   :  { %264 = dma.done.wait [#allocation5], 256  }
 0x114   :  { %265 = vsyncadd [#allocation5], 4294967040 }
 0x115   :  { %158 = vsyncpa [#allocation4], 1 }
 0x116   :  { %159 = vsyncpa [#allocation7], 1 }
 0x117   :  { %160 = vsyncpa [#allocation5], 1 }

</bundles_post_ra>
